<compile_context>
chip_gen: v7x
topology: tpu7x:2x2x1
jax: 0.10.0
libtpu: 0.0.40
codegen_flags: <defaults>
</compile_context>

<pallas_src>
import functools
import math

import jax
import jax.numpy as jnp
from jax.experimental import pallas as pl
from jax.experimental.pallas import tpu as pltpu


def _ceil_div(a, b):
    return -(-a // b)


@functools.lru_cache(maxsize=1)
def _chip_config():
    """(target_block_bytes, vmem_limit_bytes, two_tensorcores) per generation."""
    kind = ""
    try:
        kind = jax.devices()[0].device_kind.lower()
    except Exception:
        pass
    vmem_bytes = None
    try:
        vmem_bytes = int(getattr(pltpu.get_tpu_info(), "vmem_capacity_bytes", 0)) or None
    except Exception:
        vmem_bytes = None
    if vmem_bytes is None:
        vmem_bytes = (64 << 20) if "v7" in kind else (128 << 20)
    two_cores = "v7" in kind                     # v7x: 2 TensorCores / chip
    if vmem_bytes <= (64 << 20):                 # v7x-class: 64 MiB VMEM
        target_block = 4 << 20
        vmem_limit = 48 << 20
    else:                                        # v5e / v6e: 128 MiB VMEM
        target_block = 8 << 20
        vmem_limit = 96 << 20
    vmem_limit = min(vmem_limit, (vmem_bytes * 3) // 4)
    return target_block, vmem_limit, two_cores


def _sublane_pack(dsize):
    # Sublane pack: 8 for f32, 16 for bf16, 32 for int8/fp8.
    return 8 * max(1, 4 // dsize)


def _pick_tile(total, padded_row_bytes, align, target_bytes, split_for_cores):
    """Largest align-aligned row tile so one block is ~target_bytes of *padded*
    VMEM.  Keeps >=2 grid steps only on 2-TensorCore chips."""
    t = (target_bytes // max(padded_row_bytes, 1)) // align * align
    t = max(align, t)
    if t >= total:
        if split_for_cores and total >= 2 * align:
            t = min(_ceil_div(_ceil_div(total, 2), align) * align, total)
        else:
            t = total                            # full extent: always legal
    return t


# ----------------------------- channels_last -----------------------------

def _ln_last_kernel(x_ref, w_ref, b_ref, o_ref, *, eps):
    # Direct path: x_ref (tm, C); normalize over the last (lane) axis.
    x = x_ref[...].astype(jnp.float32)
    u = jnp.mean(x, axis=-1, keepdims=True)
    xc = x - u
    s = jnp.mean(xc * xc, axis=-1, keepdims=True)          # biased variance
    inv = jax.lax.rsqrt(s + eps)
    w = w_ref[...].astype(jnp.float32)                     # (1, C)
    b = b_ref[...].astype(jnp.float32)                     # (1, C)
    o_ref[...] = (xc * inv * w + b).astype(o_ref.dtype)


def _ln_last_grouped_kernel(x_ref, b_ref, a_ref, atw_ref, o_ref, *, eps, inv_c):
    # Lane-dense small-C path: x_ref (tr, W), W = G*C; every row holds G
    # independent channel groups of C consecutive lanes.
    #   reduce : one pass gives E[x] and E[x^2] via 0/1 indicator matmuls.
    #   bcast  : scale=inv and shift=-mean*inv are broadcast together with a
    #            single dot against atw = a.T * weight (affine w folded in).
    # MXU work is ~3*G MACs/elem (G<=64), far below the HBM roofline on all
    # generations; the MXU is otherwise idle in this memory-bound kernel.
    x = x_ref[...].astype(jnp.float32)                                    # (tr, W)
    a = a_ref[...]                                                        # (W, G)
    atw = atw_ref[...]                                                    # (G, W)
    tr = x.shape[0]
    mean = jnp.dot(x, a, preferred_element_type=jnp.float32) * inv_c      # (tr, G)
    ex2 = jnp.dot(x * x, a, preferred_element_type=jnp.float32) * inv_c   # (tr, G)
    var = jnp.maximum(ex2 - mean * mean, 0.0)
    inv = jax.lax.rsqrt(var + eps)                                        # scale
    shift = -mean * inv                                                   # shift
    stacked = jnp.concatenate([inv, shift], axis=0)                       # (2*tr, G)
    bc = jnp.dot(stacked, atw, preferred_element_type=jnp.float32)        # (2*tr, W)
    b = b_ref[...].astype(jnp.float32)                                    # (1, W)
    o_ref[...] = (x * bc[:tr] + bc[tr:] + b).astype(o_ref.dtype)


def _pick_group(C):
    """Minimal lane-dense regrouping for small C: W = lcm(C, 128), G = W // C.
    Returns (W, G), or None when the indicator matmuls would stop being free
    (odd / awkward C) -> direct path fallback."""
    if C >= 128:
        return None
    W = C * 128 // math.gcd(C, 128)
    G = W // C
    if W > 512 or G > 64:
        return None
    return W, G


def layernorm_channels_last(x, weight, bias, eps=1e-6):
    """F.layer_norm over the trailing axis of x (arbitrary leading shape)."""
    orig_shape = x.shape
    C = orig_shape[-1]
    M = x.size // C
    dsize = x.dtype.itemsize
    sub = _sublane_pack(dsize)
    target, vmem_limit, two_cores = _chip_config()
    x2 = x.reshape(M, C)

    grp = _pick_group(C)
    if grp is not None:
        W, G = grp
        # Pad M to a multiple of G (at most G-1 zero rows; each padded row
        # normalizes independently to `bias` and is sliced off below).
        Mp = _ceil_div(M, G) * G
        if Mp != M:
            x2 = jnp.pad(x2, ((0, Mp - M), (0, 0)))
        R = Mp // G
        xg = x2.reshape(R, W)                                 # free, row-major
        w_row = jnp.tile(weight.reshape(1, C).astype(jnp.float32), (1, G))   # (1, W)
        b_row = jnp.tile(bias.reshape(1, C).astype(jnp.float32), (1, G))     # (1, W)
        gid = jnp.arange(W, dtype=jnp.int32) // C
        a = (gid[:, None] == jnp.arange(G, dtype=jnp.int32)[None, :]
             ).astype(jnp.float32)                            # (W, G) indicator
        atw = a.T * w_row                                     # (G, W) bcast * weight
        # /2 headroom: the stacked broadcast temp is ~2x the block in VMEM.
        tr = _pick_tile(R, W * dsize, sub, target // 2, two_cores)
        out = pl.pallas_call(
            functools.partial(_ln_last_grouped_kernel, eps=eps, inv_c=1.0 / C),
            out_shape=jax.ShapeDtypeStruct((R, W), x.dtype),
            grid=(pl.cdiv(R, tr),),
            in_specs=[
                pl.BlockSpec((tr, W), lambda i: (i, 0)),
                pl.BlockSpec((1, W), lambda i: (0, 0)),
                pl.BlockSpec((W, G), lambda i: (0, 0)),       # VMEM-resident, 0/1
                pl.BlockSpec((G, W), lambda i: (0, 0)),       # VMEM-resident
            ],
            out_specs=pl.BlockSpec((tr, W), lambda i: (i, 0)),
            compiler_params=pltpu.CompilerParams(
                dimension_semantics=("parallel",),
                vmem_limit_bytes=vmem_limit),
        )(xg, b_row, a, atw)
        out = out.reshape(Mp, C)
        if Mp != M:
            out = out[:M]
        return out.reshape(orig_shape)

    # Direct path: C on lanes (lane-dense whenever C >= 128; correctness
    # fallback for awkward small C).  Rows sized by *padded* lane bytes.
    row_bytes = _ceil_div(C, 128) * 128 * dsize
    tm = _pick_tile(M, row_bytes, sub, target, two_cores)
    out = pl.pallas_call(
        functools.partial(_ln_last_kernel, eps=eps),
        out_shape=jax.ShapeDtypeStruct((M, C), x.dtype),
        grid=(pl.cdiv(M, tm),),
        in_specs=[
            pl.BlockSpec((tm, C), lambda i: (i, 0)),
            pl.BlockSpec((1, C), lambda i: (0, 0)),
            pl.BlockSpec((1, C), lambda i: (0, 0)),
        ],
        out_specs=pl.BlockSpec((tm, C), lambda i: (i, 0)),
        compiler_params=pltpu.CompilerParams(
            dimension_semantics=("parallel",),
            vmem_limit_bytes=vmem_limit),
    )(x2, weight.reshape(1, C).astype(jnp.float32),
      bias.reshape(1, C).astype(jnp.float32))
    return out.reshape(orig_shape)


# ----------------------------- channels_first ----------------------------

def _ln_first_kernel(x_ref, w_ref, b_ref, o_ref, *, eps, nb, C):
    # x_ref: (nbk, P, tl) with P = nb*C: nb consecutive images packed along
    # the sublane axis so the block is sublane-dense.  Each group of C
    # consecutive rows is one image's channel slab -> normalize it over its
    # C rows (per spatial column).  nb is tiny (1..8): unrolled Python loop.
    for g in range(nb):
        lo = g * C
        xs = x_ref[:, lo:lo + C, :].astype(jnp.float32)     # (nbk, C, tl)
        u = jnp.mean(xs, axis=1, keepdims=True)
        xc = xs - u
        var = jnp.mean(xc * xc, axis=1, keepdims=True)       # biased variance
        inv = jax.lax.rsqrt(var + eps)
        w = w_ref[:, lo:lo + C, :].astype(jnp.float32)        # (1, C, 1)
        b = b_ref[:, lo:lo + C, :].astype(jnp.float32)
        o_ref[:, lo:lo + C, :] = (xc * inv * w + b).astype(o_ref.dtype)


def layernorm_channels_first(x, weight, bias, eps=1e-6):
    """channels_first LayerNorm on an NCHW tensor (reduce over C)."""
    N, C, H, W = x.shape
    L = H * W
    dsize = x.dtype.itemsize
    sub = _sublane_pack(dsize)
    target, vmem_limit, two_cores = _chip_config()

    # Pack nb consecutive images along the sublane (channel) axis so the
    # second-minor block dim P = nb*C is a multiple of the sublane pack:
    # dense vregs / VMEM / DMA even when C < 8.  Free row-major reshape.
    nb = sub // math.gcd(C, sub)
    P = nb * C
    Np = _ceil_div(N, nb) * nb
    x3 = x.reshape(N, C, L)
    if Np != N:
        # Zero-padded images normalize to `bias` on their own; sliced off below.
        x3 = jnp.pad(x3, ((0, Np - N), (0, 0), (0, 0)))
    NB = Np // nb
    xg = x3.reshape(NB, P, L)
    w_g = jnp.tile(weight.astype(jnp.float32), (nb,)).reshape(1, P, 1)
    b_g = jnp.tile(bias.astype(jnp.float32), (nb,)).reshape(1, P, 1)

    # Lane tile sized by the *padded* (P, L) slab footprint; multiples of 128
    # (or the full L) keep loads/stores lane-dense.
    lane_pad = _ceil_div(L, 128) * 128
    slab_bytes = P * lane_pad * dsize
    if slab_bytes <= target:
        tl = L
        nbk = max(1, target // slab_bytes)
        if two_cores and NB >= 2:
            nbk = min(nbk, _ceil_div(NB, 2))      # keep >=2 steps for 2 TCs
        nbk = min(nbk, NB)
    else:
        nbk = 1
        if L >= 128:
            tl = max(128, min((target // (P * dsize)) // 128 * 128,
                              (L // 128) * 128))
        else:
            tl = L   # tiny spatial + huge channel count: single lane-padded tile

    grid = (pl.cdiv(NB, nbk), pl.cdiv(L, tl))
    out = pl.pallas_call(
        functools.partial(_ln_first_kernel, eps=eps, nb=nb, C=C),
        out_shape=jax.ShapeDtypeStruct((NB, P, L), x.dtype),
        grid=grid,
        in_specs=[
            pl.BlockSpec((nbk, P, tl), lambda i, j: (i, 0, j)),
            pl.BlockSpec((1, P, 1), lambda i, j: (0, 0, 0)),
            pl.BlockSpec((1, P, 1), lambda i, j: (0, 0, 0)),
        ],
        out_specs=pl.BlockSpec((nbk, P, tl), lambda i, j: (i, 0, j)),
        compiler_params=pltpu.CompilerParams(
            dimension_semantics=("parallel", "parallel"),
            vmem_limit_bytes=vmem_limit),
    )(xg, w_g, b_g)
    out = out.reshape(Np, C, L)
    if Np != N:
        out = out[:N]
    return out.reshape(N, C, H, W)


# -------------------------------- reference -------------------------------

def _ref_channels_last(x, w, b, eps):
    u = jnp.mean(x, axis=-1, keepdims=True)
    s = jnp.mean((x - u) ** 2, axis=-1, keepdims=True)
    return (x - u) / jnp.sqrt(s + eps) * w + b


def _ref_channels_first(x, w, b, eps):
    u = jnp.mean(x, axis=1, keepdims=True)
    s = jnp.mean((x - u) ** 2, axis=1, keepdims=True)
    y = (x - u) / jnp.sqrt(s + eps)
    return w[None, :, None, None] * y + b[None, :, None, None]


# ---------------------------------- main -----------------------------------

if __name__ == "__main__":
    key = jax.random.PRNGKey(0)
    N, C, H, W = 2, 4, 16, 16
    eps = 1e-6

    k_cf, k_cl, k_w, k_b = jax.random.split(key, 4)

    # Parameters exactly as in the module __init__ ...
    weight0 = jnp.ones((C,), jnp.float32)
    bias0 = jnp.zeros((C,), jnp.float32)
    # ... plus a random affine to exercise the scale/shift path.
    weight1 = jax.random.normal(k_w, (C,), jnp.float32)
    bias1 = jax.random.normal(k_b, (C,), jnp.float32)

    x_cf = jax.random.normal(k_cf, (N, C, H, W), jnp.float32)   # NCHW
    x_cl = jax.random.normal(k_cl, (N, H, W, C), jnp.float32)   # NHWC

    for w_p, b_p in ((weight0, bias0), (weight1, bias1)):
        out_cf = layernorm_channels_first(x_cf, w_p, b_p, eps)
        jax.block_until_ready(out_cf)
        ref_cf = _ref_channels_first(x_cf, w_p, b_p, eps)
        assert jnp.allclose(out_cf, ref_cf, atol=1e-4, rtol=1e-4), \
            "channels_first mismatch"

        out_cl = layernorm_channels_last(x_cl, w_p, b_p, eps)
        jax.block_until_ready(out_cl)
        ref_cl = _ref_channels_last(x_cl, w_p, b_p, eps)
        assert jnp.allclose(out_cl, ref_cl, atol=1e-4, rtol=1e-4), \
            "channels_last mismatch"

    print("KERNEL_OK")
</pallas_src>

<mosaic_0001>
module attributes {stable_mosaic.version = 11 : i64} {
  func.func @_ln_first_kernel(%arg0: i32, %arg1: i32, %arg2: memref<1x8x256xf32, #tpu.memory_space<vmem>>, %arg3: memref<1x8x1xf32, #tpu.memory_space<vmem>>, %arg4: memref<1x8x1xf32, #tpu.memory_space<vmem>>, %arg5: memref<1x8x256xf32, #tpu.memory_space<vmem>>) attributes {dimension_semantics = [#tpu.dimension_semantics<parallel>, #tpu.dimension_semantics<parallel>], iteration_bounds = array<i64: 1, 1>, scalar_prefetch = 0 : i64, scratch_operands = 0 : i64, tpu.core_type = #tpu.core_type<tc>, window_params = [{transform_indices = @transform_0, window_bounds = array<i64: 1, 8, 256>}, {pipeline_mode = #tpu.pipeline_mode<synchronous>, transform_indices = @transform_1, window_bounds = array<i64: 1, 8, 1>}, {pipeline_mode = #tpu.pipeline_mode<synchronous>, transform_indices = @transform_2, window_bounds = array<i64: 1, 8, 1>}, {transform_indices = @transform_3, window_bounds = array<i64: 1, 8, 256>}]} {
    %c0 = arith.constant 0 : index
    %c0_0 = arith.constant 0 : index
    %c0_1 = arith.constant 0 : index
    %0 = vector.load %arg2[%c0, %c0_0, %c0_1] : memref<1x8x256xf32, #tpu.memory_space<vmem>>, vector<1x4x256xf32>
    %cst = arith.constant dense<0.000000e+00> : vector<1x256xf32>
    %1 = vector.multi_reduction <add>, %0, %cst [1] : vector<1x4x256xf32> to vector<1x256xf32>
    %2 = vector.shape_cast %1 : vector<1x256xf32> to vector<1x1x256xf32>
    %cst_2 = arith.constant 4.000000e+00 : f32
    %3 = vector.broadcast %cst_2 : f32 to vector<1x1x256xf32>
    %4 = arith.divf %2, %3 : vector<1x1x256xf32>
    %5 = vector.broadcast %4 : vector<1x1x256xf32> to vector<1x4x256xf32>
    %6 = arith.subf %0, %5 : vector<1x4x256xf32>
    %7 = arith.mulf %6, %6 : vector<1x4x256xf32>
    %cst_3 = arith.constant dense<0.000000e+00> : vector<1x256xf32>
    %8 = vector.multi_reduction <add>, %7, %cst_3 [1] : vector<1x4x256xf32> to vector<1x256xf32>
    %9 = vector.shape_cast %8 : vector<1x256xf32> to vector<1x1x256xf32>
    %cst_4 = arith.constant 4.000000e+00 : f32
    %10 = vector.broadcast %cst_4 : f32 to vector<1x1x256xf32>
    %11 = arith.divf %9, %10 : vector<1x1x256xf32>
    %cst_5 = arith.constant 9.99999997E-7 : f32
    %12 = vector.broadcast %cst_5 : f32 to vector<1x1x256xf32>
    %13 = arith.addf %11, %12 : vector<1x1x256xf32>
    %14 = math.rsqrt %13 : vector<1x1x256xf32>
    %c0_6 = arith.constant 0 : index
    %c0_7 = arith.constant 0 : index
    %c0_8 = arith.constant 0 : index
    %15 = vector.load %arg3[%c0_6, %c0_7, %c0_8] : memref<1x8x1xf32, #tpu.memory_space<vmem>>, vector<1x4x1xf32>
    %c0_9 = arith.constant 0 : index
    %c0_10 = arith.constant 0 : index
    %c0_11 = arith.constant 0 : index
    %16 = vector.load %arg4[%c0_9, %c0_10, %c0_11] : memref<1x8x1xf32, #tpu.memory_space<vmem>>, vector<1x4x1xf32>
    %17 = vector.broadcast %14 : vector<1x1x256xf32> to vector<1x4x256xf32>
    %18 = arith.mulf %6, %17 : vector<1x4x256xf32>
    %19 = vector.broadcast %15 : vector<1x4x1xf32> to vector<1x4x256xf32>
    %20 = arith.mulf %18, %19 : vector<1x4x256xf32>
    %21 = vector.broadcast %16 : vector<1x4x1xf32> to vector<1x4x256xf32>
    %22 = arith.addf %20, %21 : vector<1x4x256xf32>
    %c0_12 = arith.constant 0 : index
    %c0_13 = arith.constant 0 : index
    %c0_14 = arith.constant 0 : index
    %23 = vector.load %arg5[%c0_12, %c0_13, %c0_14] : memref<1x8x256xf32, #tpu.memory_space<vmem>>, vector<1x4x256xf32>
    tpu.vector_store %arg5[%c0_12, %c0_13, %c0_14], %22 {strides = array<i32>} : memref<1x8x256xf32, #tpu.memory_space<vmem>>, vector<1x4x256xf32>,
    %c0_15 = arith.constant 0 : index
    %c4 = arith.constant 4 : index
    %c0_16 = arith.constant 0 : index
    %24 = vector.load %arg2[%c0_15, %c4, %c0_16] : memref<1x8x256xf32, #tpu.memory_space<vmem>>, vector<1x4x256xf32>
    %cst_17 = arith.constant dense<0.000000e+00> : vector<1x256xf32>
    %25 = vector.multi_reduction <add>, %24, %cst_17 [1] : vector<1x4x256xf32> to vector<1x256xf32>
    %26 = vector.shape_cast %25 : vector<1x256xf32> to vector<1x1x256xf32>
    %cst_18 = arith.constant 4.000000e+00 : f32
    %27 = vector.broadcast %cst_18 : f32 to vector<1x1x256xf32>
    %28 = arith.divf %26, %27 : vector<1x1x256xf32>
    %29 = vector.broadcast %28 : vector<1x1x256xf32> to vector<1x4x256xf32>
    %30 = arith.subf %24, %29 : vector<1x4x256xf32>
    %31 = arith.mulf %30, %30 : vector<1x4x256xf32>
    %cst_19 = arith.constant dense<0.000000e+00> : vector<1x256xf32>
    %32 = vector.multi_reduction <add>, %31, %cst_19 [1] : vector<1x4x256xf32> to vector<1x256xf32>
    %33 = vector.shape_cast %32 : vector<1x256xf32> to vector<1x1x256xf32>
    %cst_20 = arith.constant 4.000000e+00 : f32
    %34 = vector.broadcast %cst_20 : f32 to vector<1x1x256xf32>
    %35 = arith.divf %33, %34 : vector<1x1x256xf32>
    %cst_21 = arith.constant 9.99999997E-7 : f32
    %36 = vector.broadcast %cst_21 : f32 to vector<1x1x256xf32>
    %37 = arith.addf %35, %36 : vector<1x1x256xf32>
    %38 = math.rsqrt %37 : vector<1x1x256xf32>
    %c0_22 = arith.constant 0 : index
    %c4_23 = arith.constant 4 : index
    %c0_24 = arith.constant 0 : index
    %39 = vector.load %arg3[%c0_22, %c4_23, %c0_24] : memref<1x8x1xf32, #tpu.memory_space<vmem>>, vector<1x4x1xf32>
    %c0_25 = arith.constant 0 : index
    %c4_26 = arith.constant 4 : index
    %c0_27 = arith.constant 0 : index
    %40 = vector.load %arg4[%c0_25, %c4_26, %c0_27] : memref<1x8x1xf32, #tpu.memory_space<vmem>>, vector<1x4x1xf32>
    %41 = vector.broadcast %38 : vector<1x1x256xf32> to vector<1x4x256xf32>
    %42 = arith.mulf %30, %41 : vector<1x4x256xf32>
    %43 = vector.broadcast %39 : vector<1x4x1xf32> to vector<1x4x256xf32>
    %44 = arith.mulf %42, %43 : vector<1x4x256xf32>
    %45 = vector.broadcast %40 : vector<1x4x1xf32> to vector<1x4x256xf32>
    %46 = arith.addf %44, %45 : vector<1x4x256xf32>
    %c0_28 = arith.constant 0 : index
    %c4_29 = arith.constant 4 : index
    %c0_30 = arith.constant 0 : index
    %47 = vector.load %arg5[%c0_28, %c4_29, %c0_30] : memref<1x8x256xf32, #tpu.memory_space<vmem>>, vector<1x4x256xf32>
    tpu.vector_store %arg5[%c0_28, %c4_29, %c0_30], %46 {strides = array<i32>} : memref<1x8x256xf32, #tpu.memory_space<vmem>>, vector<1x4x256xf32>,
    return
  }
  func.func @transform_0(%arg0: i32, %arg1: i32) -> (i32, i32, i32) {
    %c0_i32 = arith.constant 0 : i32
    %c0_i32_0 = arith.constant 0 : i32
    return %arg0, %c0_i32, %arg1 : i32, i32, i32
  }
  func.func @transform_1(%arg0: i32, %arg1: i32) -> (i32, i32, i32) {
    %c0_i32 = arith.constant 0 : i32
    %c0_i32_0 = arith.constant 0 : i32
    %c0_i32_1 = arith.constant 0 : i32
    %c0_i32_2 = arith.constant 0 : i32
    return %c0_i32, %c0_i32_0, %c0_i32_1 : i32, i32, i32
  }
  func.func @transform_2(%arg0: i32, %arg1: i32) -> (i32, i32, i32) {
    %c0_i32 = arith.constant 0 : i32
    %c0_i32_0 = arith.constant 0 : i32
    %c0_i32_1 = arith.constant 0 : i32
    %c0_i32_2 = arith.constant 0 : i32
    return %c0_i32, %c0_i32_0, %c0_i32_1 : i32, i32, i32
  }
  func.func @transform_3(%arg0: i32, %arg1: i32) -> (i32, i32, i32) {
    %c0_i32 = arith.constant 0 : i32
    %c0_i32_0 = arith.constant 0 : i32
    return %arg0, %c0_i32, %arg1 : i32, i32, i32
  }
}

</mosaic_0001>

<bundles_post_ra>
// kernel: tpu_custom_call.1
= control target key start
LH: loop header
LB: loop body
LE: loop exit
PB: predicated region body
PF: predicated region fallthrough
CT: control target
= control target key end

     0   :  { %8 = vsyncpa [#allocation3], 0  ;;  %s396_s0 = inlined_call_operand.hbm [shape: f32[1,8,256], index: 0, kind: input, shape index: {}]   ;;  %s397_s1 = inlined_call_operand.hbm [shape: f32[1,8,1], index: 1, kind: input, shape index: {}]   ;;  %s398_s2 = inlined_call_operand.hbm [shape: f32[1,8,1], index: 2, kind: input, shape index: {}]   ;;  %s399_s3 = inlined_call_operand.hbm [shape: f32[1,8,256], index: 3, kind: output, shape index: {}]  }
   0x1   :  { %9 = vsyncpa [#allocation6], 0 }
   0x2   :  { %10 = vsyncpa [#allocation4], 0  ;;  %s315_s12 = smov [#allocation5]   ;;  %s316_s14 = smov [#allocation2]  }
   0x3   :  { %s27_s13 = sshll.u32 %s315_s12, 4  ;;  %s17_s15 = sshll.u32 %s316_s14, 4  ;;  %s28_s13 = int_to_ptr.vmem [resolvable:$true] %s27_s13  ;;  %s18_s15 = int_to_ptr.vmem [resolvable:$true] %s17_s15 }
   0x4   :  { %s221_s18 = scalar_lea.hbm %s397_s1, 128 }
   0x5   :  { %p222_p0 = scmp.ne.s32.totalorder %s397_s1, %s221_s18  ;;  %p225_p1 = scmp.lt.u32.totalorder %s221_s18, %s397_s1 }
   0x7   :  { %p227_p2 = pnand %p225_p1, %p222_p0 }
   0x9   :  { %230 = shalt.err (!%p227_p2)
}
   0xa   :  { %s231_s23 = scalar_lea.vmem %s28_s13, 128  ;;  %p236_p4 = scmp.lt.s32.totalorder %s28_s13, %s28_s13 }
   0xb   :  { %p232_p3 = scmp.ne.s32.totalorder %s28_s13, %s231_s23  ;;  %p237_p5 = scmp.lt.s32.totalorder %s231_s23, %s231_s23 }
   0xd   :  { %p238_p6 = por %p237_p5, %p236_p4 }
   0xf   :  { %p239_p7 = pnand %p238_p6, %p232_p3 }
  0x11   :  { %242 = shalt.err (!%p239_p7)
}
  0x12   :  { %30 = dma.hbm_to_vmem [thread:$0]  %s397_s1, 128, %s28_s13, [#allocation6]  }
  0x13   :  { %s243_s28 = scalar_lea.hbm %s396_s0, 256 }
  0x14   :  { %p244_p8 = scmp.ne.s32.totalorder %s396_s0, %s243_s28  ;;  %p247_p9 = scmp.lt.u32.totalorder %s243_s28, %s396_s0 }
  0x16   :  { %p249_p10 = pnand %p247_p9, %p244_p8 }
  0x18   :  { %252 = shalt.err (!%p249_p10)
}
  0x19   :  { %s253_s6 = scalar_lea.vmem %s18_s15, 256  ;;  %p258_p12 = scmp.lt.s32.totalorder %s18_s15, %s18_s15 }
  0x1a   :  { %p254_p11 = scmp.ne.s32.totalorder %s18_s15, %s253_s6  ;;  %p259_p13 = scmp.lt.s32.totalorder %s253_s6, %s253_s6 }
  0x1c   :  { %p260_p0 = por %p259_p13, %p258_p12 }
  0x1e   :  { %p261_p1 = pnand %p260_p0, %p254_p11 }
  0x20   :  { %264 = shalt.err (!%p261_p1)
}
  0x21   :  { %20 = dma.hbm_to_vmem [thread:$0]  %s396_s0, 256, %s18_s15, [#allocation3]  }
  0x22   :  { %s317_s8 = smov [#allocation7]   ;;  %s265_s12 = scalar_lea.hbm %s398_s2, 128 }
  0x23   :  { %s37_s9 = sshll.u32 %s317_s8, 4  ;;  %p266_p2 = scmp.ne.s32.totalorder %s398_s2, %s265_s12  ;;  %s38_s9 = int_to_ptr.vmem [resolvable:$true] %s37_s9 }
  0x24   :  { %p269_p3 = scmp.lt.u32.totalorder %s265_s12, %s398_s2 }
  0x26   :  { %p271_p4 = pnand %p269_p3, %p266_p2 }
  0x28   :  { %274 = shalt.err (!%p271_p4)
}
  0x29   :  { %s275_s18 = scalar_lea.vmem %s38_s9, 128  ;;  %p280_p6 = scmp.lt.s32.totalorder %s38_s9, %s38_s9 }
  0x2a   :  { %p276_p5 = scmp.ne.s32.totalorder %s38_s9, %s275_s18  ;;  %p281_p7 = scmp.lt.s32.totalorder %s275_s18, %s275_s18 }
  0x2c   :  { %p282_p8 = por %p281_p7, %p280_p6 }
  0x2e   :  { %p283_p9 = pnand %p282_p8, %p276_p5 }
  0x30   :  { %286 = shalt.err (!%p283_p9)
}
  0x31   :  { %40 = dma.hbm_to_vmem [thread:$0]  %s398_s2, 128, %s38_s9, [#allocation6]  }
  0x32   :  { %309 = dma.done.wait [#allocation3], 256  }
  0x33   :  { %310 = vsyncadd [#allocation3], 4294967040 }
  0x34   :  { %311 = dma.done.wait [#allocation6], 256  }
  0x35   :  { %312 = vsyncadd [#allocation6], 4294967040  ;;  %v318_v0 = vmov 0   ;;  %v169_v1 = vld [vmem:[#allocation7 + $0x4] sm:$0xf]  ;;  %vm52_vm0 = vcmask 1043456  }
  0x36   :  { %212 = vset.pattern.permute.xlu1 %v318_v0  ;;  %211 = vset.pattern.permute.xlu0 %v318_v0  ;;  %v168_v2 = vld [vmem:[#allocation5 + $0x4] sm:$0xf]  ;;  %v95_v3 = vld [vmem:[#allocation7] sm:$0xf]  ;;  %v94_v4 = vld [vmem:[#allocation5] sm:$0xf] }
  0x37   :  { %182 = vperm.xlu1 %212, %v169_v1   ;;  %174 = vperm.xlu0 %211, %v168_v2   ;;  %v114_v5 = vld [vmem:[#allocation2] sm:$0xf0]  ;;  %v115_v6 = vld [vmem:[#allocation2 + $0x8] sm:$0xf0]  ;;  %v50_v12 = vld [vmem:[#allocation2] sm:$0xf] }
  0x38   :  { %v118_v7 = vrot.slane %v114_v5, 4  ;;  %v119_v8 = vrot.slane %v115_v6, 4  ;;  %v51_v14 = vld [vmem:[#allocation2 + $0x8] sm:$0xf]  ;;  %v53_v15 = vsel %vm52_vm0, %v50_v12, 0.0  ;;  %s319_s2 = smov [#allocation8]  }
  0x39   :  { %v60_v17 = vsel %vm52_vm0, %v51_v14, 0.0  ;;  %v54_v19 = vrot.slane %v53_v15, 4  ;;  %s196_s19 = sshll.u32 %s319_s2, 4  ;;  %s197_s19 = int_to_ptr.vmem [resolvable:$true] %s196_s19 }
  0x3a   :  { %v122_v9 = vsel %vm52_vm0, %v118_v7, 0.0  ;;  %v129_v10 = vsel %vm52_vm0, %v119_v8, 0.0  ;;  %v61_v20 = vrot.slane %v60_v17, 4  ;;  %s287_s20 = scalar_lea.vmem %s197_s19, 256  ;;  %p292_p11 = scmp.lt.s32.totalorder %s197_s19, %s197_s19 }
  0x3b   :  { %107 = vperm.xlu1 %212, %v95_v3   ;;  %100 = vperm.xlu0 %211, %v94_v4   ;;  %v123_v11 = vrot.slane %v122_v9, 4  ;;  %v130_v13 = vrot.slane %v129_v10, 4  ;;  %v55_v23 = vadd.f32 %v54_v19, %v53_v15  ;;  %p288_p10 = scmp.ne.s32.totalorder %s197_s19, %s287_s20  ;;  %p293_p12 = scmp.lt.s32.totalorder %s287_s20, %s287_s20 }
  0x3c   :  { %v62_v24 = vadd.f32 %v61_v20, %v60_v17 }
  0x3d   :  { %v124_v16 = vadd.f32 %v123_v11, %v122_v9  ;;  %v131_v18 = vadd.f32 %v130_v13, %v129_v10  ;;  %v56_v27 = vrot.slane %v55_v23, 2  ;;  %p294_p13 = por %p293_p12, %p292_p11 }
  0x3e   :  { %v63_v28 = vrot.slane %v62_v24, 2 }
  0x3f   :  { %v125_v21 = vrot.slane %v124_v16, 2  ;;  %v132_v22 = vrot.slane %v131_v18, 2  ;;  %v57_v31 = vadd.f32 %v56_v27, %v55_v23  ;;  %p295_p0 = pnand %p294_p13, %p288_p10 }
  0x40   :  { %v64_v32 = vadd.f32 %v63_v28, %v62_v24 }
  0x41   :  { %v126_v25 = vadd.f32 %v125_v21, %v124_v16  ;;  %v133_v26 = vadd.f32 %v132_v22, %v131_v18  ;;  %v58_v35 = vrot.slane %v57_v31, 1 }
  0x42   :  { %v65_v36 = vrot.slane %v64_v32, 1 }
  0x43   :  { %v127_v29 = vrot.slane %v126_v25, 1  ;;  %v134_v30 = vrot.slane %v133_v26, 1  ;;  %v59_v39 = vadd.f32 %v58_v35, %v57_v31 }
  0x44   :  { %v66_v40 = vadd.f32 %v65_v36, %v64_v32 }
  0x45   :  { %v128_v33 = vadd.f32 %v127_v29, %v126_v25  ;;  %v135_v34 = vadd.f32 %v134_v30, %v133_v26  ;;  %v68_v43 = vmul.f32 0.25, %v59_v39 }
  0x46   :  { %v69_v44 = vmul.f32 0.25, %v66_v40 }
  0x47   :  { %v136_v37 = vmul.f32 0.25, %v128_v33  ;;  %v137_v38 = vmul.f32 0.25, %v135_v34  ;;  %v70_v47 = vsub.f32 %v50_v12, %v68_v43 }
  0x48   :  { %v71_v48 = vsub.f32 %v51_v14, %v69_v44 }
  0x49   :  { %v138_v41 = vsub.f32 %v114_v5, %v136_v37  ;;  %v139_v42 = vsub.f32 %v115_v6, %v137_v38  ;;  %v72_v51 = vmul.f32 %v70_v47, %v70_v47 }
  0x4a   :  { %v73_v52 = vmul.f32 %v71_v48, %v71_v48 }
  0x4b   :  { %v140_v45 = vmul.f32 %v138_v41, %v138_v41  ;;  %v141_v46 = vmul.f32 %v139_v42, %v139_v42  ;;  %v74_v55 = vsel %vm52_vm0, %v72_v51, 0.0 }
  0x4c   :  { %v81_v57 = vsel %vm52_vm0, %v73_v52, 0.0  ;;  %v75_v59 = vrot.slane %v74_v55, 4 }
  0x4d   :  { %v144_v49 = vrot.slane %v140_v45, 4  ;;  %v145_v50 = vrot.slane %v141_v46, 4  ;;  %v82_v60 = vrot.slane %v81_v57, 4 }
  0x4e   :  { %v76_v63 = vadd.f32 %v75_v59, %v74_v55 }
  0x4f   :  { %v148_v53 = vsel %vm52_vm0, %v144_v49, 0.0  ;;  %v155_v54 = vsel %vm52_vm0, %v145_v50, 0.0  ;;  %v83_v0 = vadd.f32 %v82_v60, %v81_v57 }
  0x50   :  { %v149_v56 = vrot.slane %v148_v53, 4  ;;  %v156_v58 = vrot.slane %v155_v54, 4  ;;  %v77_v3 = vrot.slane %v76_v63, 2 }
  0x51   :  { %v84_v4 = vrot.slane %v83_v0, 2 }
  0x52   :  { %v150_v61 = vadd.f32 %v149_v56, %v148_v53  ;;  %v157_v62 = vadd.f32 %v156_v58, %v155_v54  ;;  %v78_v7 = vadd.f32 %v77_v3, %v76_v63 }
  0x53   :  { %v85_v8 = vadd.f32 %v84_v4, %v83_v0 }
  0x54   :  { %v151_v1 = vrot.slane %v150_v61, 2  ;;  %v158_v2 = vrot.slane %v157_v62, 2  ;;  %v79_v11 = vrot.slane %v78_v7, 1 }
  0x55   :  { %v86_v12 = vrot.slane %v85_v8, 1 }
  0x56   :  { %v152_v5 = vadd.f32 %v151_v1, %v150_v61  ;;  %v159_v6 = vadd.f32 %v158_v2, %v157_v62  ;;  %v80_v15 = vadd.f32 %v79_v11, %v78_v7 }
  0x57   :  { %v87_v16 = vadd.f32 %v86_v12, %v85_v8 }
  0x58   :  { %v153_v9 = vrot.slane %v152_v5, 1  ;;  %v160_v10 = vrot.slane %v159_v6, 1  ;;  %v88_v19 = vmul.f32 0.25, %v80_v15 }
  0x59   :  { %v89_v20 = vmul.f32 0.25, %v87_v16 }
  0x5a   :  { %v154_v13 = vadd.f32 %v153_v9, %v152_v5  ;;  %v161_v14 = vadd.f32 %v160_v10, %v159_v6  ;;  %v90_v23 = vadd.f32 1e-06, %v88_v19 }
  0x5b   :  { %v91_v24 = vadd.f32 1e-06, %v89_v20 }
  0x5c   :  { %v162_v17 = vmul.f32 0.25, %v154_v13  ;;  %v163_v18 = vmul.f32 0.25, %v161_v14 }
  0x5e   :  { %v164_v21 = vadd.f32 1e-06, %v162_v17  ;;  %v165_v22 = vadd.f32 1e-06, %v163_v18 }
  0x60   :  { %213 = vrsqrt.f32 %v164_v21 }
  0x61   :  { %215 = vrsqrt.f32 %v165_v22 }
  0x62   :  { %217 = vrsqrt.f32 %v90_v23 }
  0x63   :  { %219 = vrsqrt.f32 %v91_v24 }
  0x6a   :  { %v214_v25 = vpop.eup %213 }
  0x6b   :  { %v216_v26 = vpop.eup %215  ;;  %v170_v29 = vmul.f32 %v214_v25, %v138_v41 }
  0x6c   :  { %v218_v27 = vpop.eup %217  ;;  %v171_v30 = vmul.f32 %v216_v26, %v139_v42 }
  0x6d   :  { %v220_v28 = vpop.eup %219  ;;  %v96_v35 = vmul.f32 %v218_v27, %v70_v47 }
  0x6e   :  { %v97_v36 = vmul.f32 %v220_v28, %v71_v48 }
  0xb6   :  { %v183_v31 = vpop.permute.xlu1 %182  ;;  %v175_v32 = vpop.permute.xlu0 %174 }
  0xb7   :  { %v184_v33 = vrot.slane %v183_v31, 4  ;;  %v176_v34 = vrot.slane %v175_v32, 4 }
  0xb9   :  { %v178_v37 = vmul.f32 %v176_v34, %v170_v29  ;;  %v179_v38 = vmul.f32 %v176_v34, %v171_v30 }
  0xba   :  { %v101_v39 = vpop.permute.xlu0 %100  ;;  %v108_v46 = vpop.permute.xlu1 %107 }
  0xbb   :  { %v186_v40 = vadd.f32 %v184_v33, %v178_v37  ;;  %v187_v43 = vadd.f32 %v184_v33, %v179_v38  ;;  %v103_v44 = vmul.f32 %v101_v39, %v96_v35  ;;  %v104_v45 = vmul.f32 %v101_v39, %v97_v36 }
  0xbd   :  { %188 = vst [vmem:[#allocation8] sm:$0xf0] %v186_v40  ;;  %189 = vst [vmem:[#allocation8 + $0x8] sm:$0xf0] %v187_v43  ;;  %v110_v41 = vadd.f32 %v108_v46, %v103_v44  ;;  %v111_v42 = vadd.f32 %v108_v46, %v104_v45 }
  0xbf   :  { %112 = vst [vmem:[#allocation8] sm:$0xf] %v110_v41  ;;  %113 = vst [vmem:[#allocation8 + $0x8] sm:$0xf] %v111_v42 }
  0xc0   :  { %298 = shalt.err (!%p295_p0)
}
  0xc1   :  { %s299_s23 = scalar_lea.hbm %s399_s3, 256 }
  0xc2   :  { %p300_p1 = scmp.ne.s32.totalorder %s399_s3, %s299_s23  ;;  %p303_p2 = scmp.lt.u32.totalorder %s299_s23, %s399_s3 }
  0xc4   :  { %p305_p3 = pnand %p303_p2, %p300_p1 }
  0xc6   :  { %308 = shalt.err (!%p305_p3)
}
  0xc7   :  { %199 = dma.vmem_to_hbm [thread:$0]  %s197_s19, 256, %s399_s3, [#allocation4]  }
  0xc8   :  { %313 = dma.done.wait [#allocation4], 256  }
  0xc9   :  { %314 = vsyncadd [#allocation4], 4294967040 }
  0xca   :  { %203 = vsyncpa [#allocation3], 1 }
  0xcb   :  { %204 = vsyncpa [#allocation6], 1 }
  0xcc   :  { %205 = vsyncpa [#allocation4], 1 }

</bundles_post_ra>
